<compile_context>
chip_gen: v7x
topology: tpu7x:2x2x1
jax: 0.10.0
libtpu: 0.0.40
codegen_flags: <defaults>
</compile_context>

<pallas_src>
import functools

import jax
import jax.numpy as jnp
from jax import lax
from jax.experimental import pallas as pl
from jax.experimental.pallas import tpu as pltpu


def _round_up(x, m):
    return ((x + m - 1) // m) * m


def _vmem_capacity_bytes():
    try:
        return int(pltpu.get_tpu_info().vmem_capacity_bytes)
    except Exception:
        return 64 * 1024 * 1024  # conservative default (v7x per-TensorCore VMEM)


def _plan(bc, hw, itemsize, tk=None):
    """Pick the K tile (multiple of 128) and scoped-VMEM limit per chip gen."""
    cap = _vmem_capacity_bytes()
    if cap <= 64 * 1024 * 1024:      # v7x: 64 MiB per TC -> tighter scoped budget
        budget, tk_cap = 48 * 1024 * 1024, 4096
    else:                            # v5e / v6e: 128 MiB -> bigger K tiles
        budget, tk_cap = 60 * 1024 * 1024, 8192
    # Resident f32 accumulator/output (+ possible dbuf) + single-buffered
    # target + slack for compiler-internal scratch.
    fixed = 4 * bc * bc * 4 + bc * bc * itemsize + (2 << 20)
    if tk is None:
        avail = max(budget - fixed, 1 << 20)
        tk = (avail // (2 * bc * itemsize)) // 128 * 128  # dbuf'd (bc, tk) input
        tk = max(128, min(tk, tk_cap, _round_up(hw, 128)))
    else:
        tk = max(128, _round_up(tk, 128))
    n_k = (hw + tk - 1) // tk
    vmem_limit = int(min(max(2 * bc * tk * itemsize + fixed + (4 << 20),
                             32 * 1024 * 1024), budget))
    return tk, n_k, vmem_limit


def _masked_tile(x_ref, k, hw, tk):
    """Load the (bc, tk) tile; zero columns past hw on the ragged last tile."""
    x = x_ref[...]
    if hw % tk != 0:
        # Static check: only emit the mask when a ragged tile exists.  The
        # compare+select rides the VPU, which has slack in this mem-bound loop.
        col = lax.broadcasted_iota(jnp.int32, x.shape, 1) + k * tk
        x = jnp.where(col < hw, x, jnp.zeros_like(x))
    return x


def _gram_kernel(x_ref, g_ref, *, hw, tk, inv_n):
    k = pl.program_id(0)

    @pl.when(k == 0)
    def _():
        g_ref[...] = jnp.zeros_like(g_ref)

    x = _masked_tile(x_ref, k, hw, tk)
    # Contract dim 1 of both operands => no transposed copy of X materialized.
    g_ref[...] += lax.dot_general(
        x, x,
        dimension_numbers=(((1,), (1,)), ((), ())),
        preferred_element_type=jnp.float32)

    @pl.when(k == pl.num_programs(0) - 1)
    def _():
        g_ref[...] *= inv_n


def _style_loss_kernel(x_ref, t_hbm, loss_ref, acc_ref, t_vmem, t_sem,
                       *, hw, tk, inv_n, inv_m):
    k = pl.program_id(0)

    @pl.when(k == 0)
    def _():
        acc_ref[...] = jnp.zeros_like(acc_ref)
        # Single-buffered fetch of the constant target gram, overlapped with
        # the entire K loop (waited on only at the last step).
        pltpu.make_async_copy(t_hbm, t_vmem, t_sem.at[0]).start()

    x = _masked_tile(x_ref, k, hw, tk)
    acc_ref[...] += lax.dot_general(
        x, x,
        dimension_numbers=(((1,), (1,)), ((), ())),
        preferred_element_type=jnp.float32)

    @pl.when(k == pl.num_programs(0) - 1)
    def _():
        pltpu.make_async_copy(t_hbm, t_vmem, t_sem.at[0]).wait()
        g = acc_ref[...] * inv_n
        d = g - t_vmem[...].astype(jnp.float32)
        loss_ref[0, 0] = jnp.sum(d * d) * inv_m


def gram_matrix(x, *, tk=None):
    """Pallas equivalent of gram_martrix(x) for NCHW input x (f32 output)."""
    b, c, h, w = x.shape
    bc, hw = b * c, h * w
    x_ = x.reshape(bc, hw)  # no padding: ragged last K tile is masked in-kernel
    itemsize = x_.dtype.itemsize
    tk, n_k, vmem_limit = _plan(bc, hw, itemsize, tk)
    kernel = functools.partial(_gram_kernel, hw=hw, tk=tk,
                               inv_n=1.0 / (b * c * h * w))
    return pl.pallas_call(
        kernel,
        out_shape=jax.ShapeDtypeStruct((bc, bc), jnp.float32),
        grid=(n_k,),
        in_specs=[pl.BlockSpec((bc, tk), lambda k: (0, k))],
        out_specs=pl.BlockSpec((bc, bc), lambda k: (0, 0)),  # resident accumulator
        compiler_params=pltpu.CompilerParams(
            dimension_semantics=("arbitrary",),
            vmem_limit_bytes=vmem_limit),
        cost_estimate=pl.CostEstimate(
            flops=2 * bc * bc * hw,
            transcendentals=0,
            bytes_accessed=bc * hw * itemsize + bc * bc * 4),
    )(x_)


def style_loss_forward(x, target_gram, *, tk=None):
    """Forward pass of styleLoss: returns (x, mse_loss(gram(x), target_gram))."""
    b, c, h, w = x.shape
    bc, hw = b * c, h * w
    x_ = x.reshape(bc, hw)
    itemsize = x_.dtype.itemsize
    tk, n_k, vmem_limit = _plan(bc, hw, itemsize, tk)
    kernel = functools.partial(
        _style_loss_kernel, hw=hw, tk=tk,
        inv_n=1.0 / (b * c * h * w), inv_m=1.0 / (bc * bc))
    loss = pl.pallas_call(
        kernel,
        out_shape=jax.ShapeDtypeStruct((1, 1), jnp.float32),
        grid=(n_k,),
        in_specs=[
            pl.BlockSpec((bc, tk), lambda k: (0, k)),
            pl.BlockSpec(memory_space=pl.ANY),  # target stays in HBM; manual copy
        ],
        out_specs=pl.BlockSpec(memory_space=pltpu.MemorySpace.SMEM),
        scratch_shapes=[
            pltpu.VMEM((bc, bc), jnp.float32),        # gram accumulator
            pltpu.VMEM((bc, bc), target_gram.dtype),  # single-buffered target
            pltpu.SemaphoreType.DMA((1,)),
        ],
        compiler_params=pltpu.CompilerParams(
            dimension_semantics=("arbitrary",),
            vmem_limit_bytes=vmem_limit),
        cost_estimate=pl.CostEstimate(
            flops=2 * bc * bc * hw,
            transcendentals=0,
            bytes_accessed=bc * hw * itemsize + bc * bc * 4 + 4),
    )(x_, target_gram)
    # Module returns x unchanged (identity pass-through); loss is the side value.
    return x, loss[0, 0]


def _gram_ref(t):
    bb, cc, hh, ww = t.shape
    t_ = t.reshape(bb * cc, hh * ww).astype(jnp.float32)
    g = jnp.dot(t_, t_.T, precision=lax.Precision.HIGHEST)
    return g / (bb * cc * hh * ww)


if __name__ == "__main__":
    key = jax.random.PRNGKey(0)
    k_target, k_x = jax.random.split(key)

    # Small NCHW feature maps consistent with the module.
    b, c, h, w = 2, 4, 16, 16
    target = jax.random.normal(k_target, (b, c, h, w), dtype=jnp.float32)
    x = jax.random.normal(k_x, (b, c, h, w), dtype=jnp.float32)

    # __init__: detached target gram via the Pallas gram kernel.
    target_gram = gram_matrix(target)
    # forward(x)
    x_out, loss = style_loss_forward(x, target_gram)
    jax.block_until_ready((x_out, loss))

    loss_ref = jnp.mean((_gram_ref(x) - _gram_ref(target)) ** 2)
    assert jnp.allclose(x_out, x), "pass-through output mismatch"
    assert jnp.allclose(target_gram, _gram_ref(target), rtol=1e-4, atol=1e-5)
    assert jnp.allclose(loss, loss_ref, rtol=1e-4, atol=1e-6), (loss, loss_ref)

    # Ragged-K self-check: hw=24*24=576 with forced tk=128 -> 5 K steps,
    # last tile has 64 valid columns (exercises the in-kernel mask path).
    h2 = w2 = 24
    target2 = jax.random.normal(jax.random.PRNGKey(1), (b, c, h2, w2), jnp.float32)
    x2 = jax.random.normal(jax.random.PRNGKey(2), (b, c, h2, w2), jnp.float32)
    target_gram2 = gram_matrix(target2, tk=128)
    _, loss2 = style_loss_forward(x2, target_gram2, tk=128)
    jax.block_until_ready(loss2)
    loss2_ref = jnp.mean((_gram_ref(x2) - _gram_ref(target2)) ** 2)
    assert jnp.allclose(target_gram2, _gram_ref(target2), rtol=1e-4, atol=1e-5)
    assert jnp.allclose(loss2, loss2_ref, rtol=1e-4, atol=1e-6), (loss2, loss2_ref)

    print("KERNEL_OK")
</pallas_src>

<mosaic_0001>
module attributes {stable_mosaic.version = 11 : i64} {
  func.func @_gram_kernel(%arg0: i32, %arg1: memref<8x256xf32, #tpu.memory_space<vmem>>, %arg2: memref<8x8xf32, #tpu.memory_space<vmem>>) attributes {dimension_semantics = [#tpu.dimension_semantics<arbitrary>], iteration_bounds = array<i64: 1>, scalar_prefetch = 0 : i64, scratch_operands = 0 : i64, tpu.core_type = #tpu.core_type<tc>, window_params = [{transform_indices = @transform_0, window_bounds = array<i64: 8, 256>}, {pipeline_mode = #tpu.pipeline_mode<synchronous>, transform_indices = @transform_1, window_bounds = array<i64: 8, 8>}]} {
    %c0_i32 = arith.constant 0 : i32
    %0 = arith.cmpi eq, %arg0, %c0_i32 : i32
    %1 = arith.extui %0 : i1 to i32
    %c0_i32_0 = arith.constant 0 : i32
    %2 = arith.cmpi ne, %1, %c0_i32_0 : i32
    scf.if %2 {
      %cst_8 = arith.constant 0.000000e+00 : f32
      %11 = vector.broadcast %cst_8 : f32 to vector<8x8xf32>
      %c0_9 = arith.constant 0 : index
      %c0_10 = arith.constant 0 : index
      %12 = vector.load %arg2[%c0_9, %c0_10] : memref<8x8xf32, #tpu.memory_space<vmem>>, vector<8x8xf32>
      tpu.vector_store %arg2[%c0_9, %c0_10], %11 {strides = array<i32>} : memref<8x8xf32, #tpu.memory_space<vmem>>, vector<8x8xf32>,
    } else {
    }
    %c0 = arith.constant 0 : index
    %c0_1 = arith.constant 0 : index
    %3 = vector.load %arg1[%c0, %c0_1] : memref<8x256xf32, #tpu.memory_space<vmem>>, vector<8x256xf32>
    %c0_2 = arith.constant 0 : index
    %c0_3 = arith.constant 0 : index
    %4 = vector.load %arg2[%c0_2, %c0_3] : memref<8x8xf32, #tpu.memory_space<vmem>>, vector<8x8xf32>
    %cst = arith.constant dense<0.000000e+00> : vector<8x8xf32>
    %5 = tpu.matmul %3, %3, %cst {dimension_numbers = #tpu.dot_dimension_numbers<[1], [1], [0], [0], [0, 0, 1, 0], [], []>} : vector<8x256xf32>, vector<8x256xf32>, vector<8x8xf32> -> vector<8x8xf32>
    %6 = arith.addf %4, %5 : vector<8x8xf32>
    %c0_4 = arith.constant 0 : index
    %c0_5 = arith.constant 0 : index
    %7 = vector.load %arg2[%c0_4, %c0_5] : memref<8x8xf32, #tpu.memory_space<vmem>>, vector<8x8xf32>
    tpu.vector_store %arg2[%c0_4, %c0_5], %6 {strides = array<i32>} : memref<8x8xf32, #tpu.memory_space<vmem>>, vector<8x8xf32>,
    %c0_i32_6 = arith.constant 0 : i32
    %8 = arith.cmpi eq, %arg0, %c0_i32_6 : i32
    %9 = arith.extui %8 : i1 to i32
    %c0_i32_7 = arith.constant 0 : i32
    %10 = arith.cmpi ne, %9, %c0_i32_7 : i32
    scf.if %10 {
      %c0_8 = arith.constant 0 : index
      %c0_9 = arith.constant 0 : index
      %11 = vector.load %arg2[%c0_8, %c0_9] : memref<8x8xf32, #tpu.memory_space<vmem>>, vector<8x8xf32>
      %cst_10 = arith.constant 4.8828125E-4 : f32
      %12 = vector.broadcast %cst_10 : f32 to vector<8x8xf32>
      %13 = arith.mulf %11, %12 : vector<8x8xf32>
      %c0_11 = arith.constant 0 : index
      %c0_12 = arith.constant 0 : index
      %14 = vector.load %arg2[%c0_11, %c0_12] : memref<8x8xf32, #tpu.memory_space<vmem>>, vector<8x8xf32>
      tpu.vector_store %arg2[%c0_11, %c0_12], %13 {strides = array<i32>} : memref<8x8xf32, #tpu.memory_space<vmem>>, vector<8x8xf32>,
    } else {
    }
    return
  }
  func.func @transform_0(%arg0: i32) -> (i32, i32) {
    %c0_i32 = arith.constant 0 : i32
    %c0_i32_0 = arith.constant 0 : i32
    return %c0_i32, %arg0 : i32, i32
  }
  func.func @transform_1(%arg0: i32) -> (i32, i32) {
    %c0_i32 = arith.constant 0 : i32
    %c0_i32_0 = arith.constant 0 : i32
    %c0_i32_1 = arith.constant 0 : i32
    return %c0_i32, %c0_i32_0 : i32, i32
  }
}

</mosaic_0001>

<bundles_post_ra>
// kernel: tpu_custom_call.1
= control target key start
LH: loop header
LB: loop body
LE: loop exit
PB: predicated region body
PF: predicated region fallthrough
CT: control target
= control target key end

     0   :  { %6 = vsyncpa [#allocation3], 0  ;;  %s215_s0 = inlined_call_operand.hbm [shape: f32[8,256], index: 0, kind: input, shape index: {}]   ;;  %s216_s1 = inlined_call_operand.hbm [shape: f32[8,8], index: 1, kind: output, shape index: {}]  }
   0x1   :  { %7 = vsyncpa [#allocation4], 0  ;;  %s175_s6 = smov [#allocation2]   ;;  %s127_s10 = scalar_lea.hbm %s215_s0, 256 }
   0x2   :  { %s14_s7 = sshll.u32 %s175_s6, 4  ;;  %p128_p0 = scmp.ne.s32.totalorder %s215_s0, %s127_s10  ;;  %s15_s7 = int_to_ptr.vmem [resolvable:$true] %s14_s7 }
   0x3   :  { %p131_p1 = scmp.lt.u32.totalorder %s127_s10, %s215_s0 }
   0x5   :  { %p133_p2 = pnand %p131_p1, %p128_p0 }
   0x7   :  { %136 = shalt.err (!%p133_p2)
}
   0x8   :  { %s137_s15 = scalar_lea.vmem %s15_s7, 256  ;;  %p142_p4 = scmp.lt.s32.totalorder %s15_s7, %s15_s7 }
   0x9   :  { %p138_p3 = scmp.ne.s32.totalorder %s15_s7, %s137_s15  ;;  %p143_p5 = scmp.lt.s32.totalorder %s137_s15, %s137_s15 }
   0xb   :  { %p144_p6 = por %p143_p5, %p142_p4 }
   0xd   :  { %p145_p7 = pnand %p144_p6, %p138_p3 }
   0xf   :  { %148 = shalt.err (!%p145_p7)
}
  0x10   :  { %17 = dma.hbm_to_vmem [thread:$0]  %s215_s0, 256, %s15_s7, [#allocation3]  }
  0x11   :  { %171 = dma.done.wait [#allocation3], 256  }
  0x12   :  { %172 = vsyncadd [#allocation3], 4294967040  ;;  %vm25_vm0 = vcmask 64512   ;;  %v176_v0 = vmov 0.0   ;;  %v28_v1 = vld [vmem:[#allocation2 + $0x8] sm:$0xff]  ;;  %v27_v2 = vld [vmem:[#allocation2] sm:$0xff] }
  0x13   :  { %26 = vst.msk [vmem:[#allocation5] sm:$0xff] %vm25_vm0, %v176_v0  ;;  %30 = vmatprep.subr.mxu0 %v28_v1  ;;  %94 = vmatprep.mubr.f32.mxu0 %v28_v1  ;;  %s177_s18 = smov [#allocation5]  }
  0x14   :  { %31 = vmatpush1.xpose.msra.mxu0 %v27_v2  ;;  %s115_s0 = sshll.u32 %s177_s18, 4  ;;  %s116_s0 = int_to_ptr.vmem [resolvable:$true] %s115_s0 }
  0x15   :  { %s149_s19 = scalar_lea.vmem %s116_s0, 128  ;;  %p154_p9 = scmp.lt.s32.totalorder %s116_s0, %s116_s0 }
  0x16   :  { %p150_p8 = scmp.ne.s32.totalorder %s116_s0, %s149_s19  ;;  %p155_p10 = scmp.lt.s32.totalorder %s149_s19, %s149_s19 }
  0x17   :  { %95 = vmatmul.mubr.f32.vlgmr.msra.gmra.mrb[0].mxu0 %v27_v2 }
  0x18   :  { %p156_p11 = por %p155_p10, %p154_p9 }
  0x1a   :  { %v29_v3 = vld [vmem:[#allocation5] sm:$0xff]  ;;  %p157_p12 = pnand %p156_p11, %p150_p8 }
  0xea   :  { %v96_v4 = vpop.f32.mrb[0].mxu0 }
  0xeb   :  { %v100_v5 = vadd.f32 %v96_v4, %v29_v3  ;;  %v98_v6 = vpop.f32.mrb[1].mxu0 }
  0xed   :  { %102 = vst.msk [vmem:[#allocation5] sm:$0xff] %vm25_vm0, %v100_v5 }
  0xf4   :  { %v106_v7 = vld [vmem:[#allocation5] sm:$0xff] }
  0xf5   :  { %v107_v8 = vmul.f32 0.00048828125, %v106_v7 }
  0xf7   :  { %108 = vst.msk [vmem:[#allocation5] sm:$0xff] %vm25_vm0, %v107_v8 }
  0xf8   :  { %160 = shalt.err (!%p157_p12)
}
  0xf9   :  { %s161_s22 = scalar_lea.hbm %s216_s1, 128 }
  0xfa   :  { %p162_p13 = scmp.ne.s32.totalorder %s216_s1, %s161_s22  ;;  %p165_p0 = scmp.lt.u32.totalorder %s161_s22, %s216_s1 }
  0xfc   :  { %p167_p1 = pnand %p165_p0, %p162_p13 }
  0xfe   :  { %170 = shalt.err (!%p167_p1)
}
  0xff   :  { %118 = dma.vmem_to_hbm [thread:$0]  %s116_s0, 128, %s216_s1, [#allocation4]  }
 0x100   :  { %173 = dma.done.wait [#allocation4], 128  }
 0x101   :  { %174 = vsyncadd [#allocation4], 4294967168 }
 0x102   :  { %122 = vsyncpa [#allocation3], 1 }
 0x103   :  { %123 = vsyncpa [#allocation4], 1 }

</bundles_post_ra>
